<compile_context>
chip_gen: v6e
topology: v6e:2x2x1
jax: 0.10.0
libtpu: 0.0.40
codegen_flags: <defaults>
</compile_context>

<pallas_src>
import jax
import jax.numpy as jnp
from jax.experimental import pallas as pl
from jax.experimental.pallas import tpu as pltpu

_SUBLANE = 8      # f32 sublane packing
_LANE = 128


def _soft_gated_kernel(x_ref, w_ref, b_ref, o_ref):
    # x_ref: (R, TP)  R = nb*C channel rows of nb images; pixels on lanes
    # w_ref: (R, R)   block-diagonal gated weight kron(I_nb, W + diag(sigmoid(a)))
    # b_ref: (R, 1)   conv bias tiled over the nb images, broadcast along lanes
    # o_ref: (R, TP)
    # Gate folded into the weight -> whole op is one matmul + bias.
    # (At C=4 the MXU is nearly idle, but the op is HBM-bound so that's fine.)
    y = jnp.dot(w_ref[...], x_ref[...], preferred_element_type=jnp.float32)
    o_ref[...] = (y + b_ref[...]).astype(o_ref.dtype)


def _pick_nb(N, C, *, max_rows=256):
    """Batch images packed per row-block (rows = nb*C).

    Prefer the smallest divisor of N whose row count is sublane-aligned (fills
    f32 vregs / VMEM tiles); else fall back to the full batch (full-extent
    first dim is always a legal block shape); last resort: per-image blocks."""
    for nb in range(1, N + 1):
        rows = nb * C
        if N % nb == 0 and rows % _SUBLANE == 0 and rows <= max_rows:
            return nb
    if N * C <= max_rows:
        return N
    return 1


def _choose_tiling(N, C, P, itemsize, *,
                   budget_bytes=24 << 20,        # dbl-buffered in+out blocks
                   target_block_bytes=4 << 20):  # MiB-scale DMAs amortize the ~0.35us step
    nb = _pick_nb(N, C)
    rows = nb * C
    rows_pad = -(-rows // _SUBLANE) * _SUBLANE    # Mosaic pads sublanes to 8 (f32)

    # Pixel (lane) tile: reach the per-block traffic target, capped by the
    # VMEM budget (2 buffers x (in + out) blocks), rounded to a multiple of 128.
    tp = min(max(target_block_bytes // (rows_pad * itemsize), _LANE),
             max(budget_bytes // (4 * rows_pad * itemsize), _LANE))
    tp = max(_LANE, (tp // _LANE) * _LANE)
    if tp >= P:
        tp = P            # full pixel extent: always a legal block dim

    # Keep >=2 grid steps when there is real work: feeds both v7x TensorCores
    # and keeps the DMA pipeline overlapping prefetch/compute/writeback.
    if (N // nb) * pl.cdiv(P, tp) < 2 and rows_pad * P * itemsize >= (4 << 20):
        half = (P + 1) // 2
        tp = -(-half // _LANE) * _LANE
    return nb, rows, rows_pad, tp


def soft_gated_skip_connection(x_nchw, w_conv, b_conv, alphas):
    """out = x * sigmoid(alphas) + conv1x1(x; w_conv, b_conv)   (NCHW)

    x_nchw: (N, C, H, W)
    w_conv: (C, C, 1, 1)  PyTorch OIHW 1x1 conv weight
    b_conv: (C,)
    alphas: (1, C, 1, 1)
    """
    N, C, H, W = x_nchw.shape
    P = H * W
    dtype = x_nchw.dtype
    itemsize = jnp.dtype(dtype).itemsize
    # NOTE: bf16 storage for x/out/params would halve HBM traffic on this
    # bandwidth-bound op; kept f32 to match the f32 reference exactly.

    nb, rows, rows_pad, tp = _choose_tiling(N, C, P, itemsize)

    # (N, C, H, W) -> (N*C, P): free contiguous reshape; pixels land on lanes.
    x2 = x_nchw.reshape(N * C, P)

    # Fold the skip gate into the 1x1 conv weight.
    w_mat = w_conv[:, :, 0, 0].astype(jnp.float32)                  # (C_out, C_in)
    gate = jax.nn.sigmoid(alphas.astype(jnp.float32)).reshape(C)
    w_gated = w_mat + jnp.diag(gate)
    if nb > 1:
        # Block-diagonal weight: one 2-D matmul handles nb images per block.
        w_blk = jnp.kron(jnp.eye(nb, dtype=jnp.float32), w_gated)   # (rows, rows)
        bias = jnp.tile(b_conv.astype(jnp.float32), nb).reshape(rows, 1)
    else:
        w_blk = w_gated
        bias = b_conv.astype(jnp.float32).reshape(rows, 1)
    w_blk = w_blk.astype(dtype)
    bias = bias.astype(dtype)

    grid = (N // nb, pl.cdiv(P, tp))

    # VMEM footprint including layout padding (sublanes -> 8, lanes -> 128).
    tp_pad = tp if tp % _LANE == 0 else -(-tp // _LANE) * _LANE
    w_cols_pad = -(-rows // _LANE) * _LANE
    block_bytes = rows_pad * tp_pad * itemsize
    vmem_need = (2 * 2 * block_bytes                       # dbl-buffered in + out
                 + 2 * rows_pad * w_cols_pad * itemsize    # weight
                 + 2 * rows_pad * _LANE * itemsize)        # bias
    vmem_limit = int(min(max(vmem_need + (4 << 20), 32 << 20), 48 << 20))

    out2 = pl.pallas_call(
        _soft_gated_kernel,
        out_shape=jax.ShapeDtypeStruct((N * C, P), dtype),
        grid_spec=pltpu.PrefetchScalarGridSpec(
            num_scalar_prefetch=0,
            grid=grid,
            in_specs=[
                pl.BlockSpec((rows, tp), lambda i, j: (i, j)),      # x block
                pl.BlockSpec((rows, rows), lambda i, j: (0, 0)),    # weight (resident)
                pl.BlockSpec((rows, 1), lambda i, j: (0, 0)),       # bias   (resident)
            ],
            out_specs=pl.BlockSpec((rows, tp), lambda i, j: (i, j)),
        ),
        compiler_params=pltpu.CompilerParams(
            dimension_semantics=("parallel", "parallel"),
            vmem_limit_bytes=vmem_limit),
        cost_estimate=pl.CostEstimate(
            flops=2 * C * C * N * P,
            transcendentals=0,
            bytes_accessed=(2 * N * C * P * itemsize
                            + rows * rows * itemsize + rows * itemsize)),
    )(x2, w_blk, bias)

    return out2.reshape(N, C, H, W)                   # free, contiguous reshape


def reference(x_nchw, w_conv, b_conv, alphas):
    gate = jax.nn.sigmoid(alphas)                     # (1, C, 1, 1)
    conv = jax.lax.conv_general_dilated(
        x_nchw, w_conv, window_strides=(1, 1), padding="VALID",
        dimension_numbers=("NCHW", "OIHW", "NCHW"))
    conv = conv + b_conv.reshape(1, -1, 1, 1)
    return x_nchw * gate + conv


if __name__ == "__main__":
    key = jax.random.PRNGKey(0)
    N, C, H, W = 2, 4, 16, 16
    k_x, k_w, k_b = jax.random.split(key, 3)

    x = jax.random.normal(k_x, (N, C, H, W), dtype=jnp.float32)
    # Deterministic synthetic parameters (not a checkpoint load).
    w_conv = jax.random.normal(k_w, (C, C, 1, 1), dtype=jnp.float32) * 0.1
    b_conv = jax.random.normal(k_b, (C,), dtype=jnp.float32) * 0.1
    alphas = jnp.ones((1, C, 1, 1), dtype=jnp.float32)   # nn.Parameter(torch.ones(...))

    out = soft_gated_skip_connection(x, w_conv, b_conv, alphas)
    out = jax.block_until_ready(out)

    ref = reference(x, w_conv, b_conv, alphas)
    assert out.shape == (N, C, H, W)
    assert jnp.allclose(out, ref, atol=1e-5, rtol=1e-5), "mismatch vs reference"

    print("KERNEL_OK")
</pallas_src>

<mosaic_0001>
module attributes {stable_mosaic.version = 11 : i64} {
  func.func @_soft_gated_kernel(%arg0: i32, %arg1: i32, %arg2: memref<8x256xf32, #tpu.memory_space<vmem>>, %arg3: memref<8x8xf32, #tpu.memory_space<vmem>>, %arg4: memref<8x1xf32, #tpu.memory_space<vmem>>, %arg5: memref<8x256xf32, #tpu.memory_space<vmem>>) attributes {dimension_semantics = [#tpu.dimension_semantics<parallel>, #tpu.dimension_semantics<parallel>], iteration_bounds = array<i64: 1, 1>, scalar_prefetch = 0 : i64, scratch_operands = 0 : i64, tpu.core_type = #tpu.core_type<tc>, window_params = [{transform_indices = @transform_0, window_bounds = array<i64: 8, 256>}, {pipeline_mode = #tpu.pipeline_mode<synchronous>, transform_indices = @transform_1, window_bounds = array<i64: 8, 8>}, {pipeline_mode = #tpu.pipeline_mode<synchronous>, transform_indices = @transform_2, window_bounds = array<i64: 8, 1>}, {transform_indices = @transform_3, window_bounds = array<i64: 8, 256>}]} {
    %c0 = arith.constant 0 : index
    %c0_0 = arith.constant 0 : index
    %0 = vector.load %arg3[%c0, %c0_0] : memref<8x8xf32, #tpu.memory_space<vmem>>, vector<8x8xf32>
    %c0_1 = arith.constant 0 : index
    %c0_2 = arith.constant 0 : index
    %1 = vector.load %arg2[%c0_1, %c0_2] : memref<8x256xf32, #tpu.memory_space<vmem>>, vector<8x256xf32>
    %cst = arith.constant dense<0.000000e+00> : vector<8x256xf32>
    %2 = tpu.matmul %0, %1, %cst {dimension_numbers = #tpu.dot_dimension_numbers<[1], [0], [0], [1], [0, 0, 1, 1], [], []>} : vector<8x8xf32>, vector<8x256xf32>, vector<8x256xf32> -> vector<8x256xf32>
    %c0_3 = arith.constant 0 : index
    %c0_4 = arith.constant 0 : index
    %3 = vector.load %arg4[%c0_3, %c0_4] : memref<8x1xf32, #tpu.memory_space<vmem>>, vector<8x1xf32>
    %4 = vector.broadcast %3 : vector<8x1xf32> to vector<8x256xf32>
    %5 = arith.addf %2, %4 : vector<8x256xf32>
    %c0_5 = arith.constant 0 : index
    %c0_6 = arith.constant 0 : index
    %6 = vector.load %arg5[%c0_5, %c0_6] : memref<8x256xf32, #tpu.memory_space<vmem>>, vector<8x256xf32>
    tpu.vector_store %arg5[%c0_5, %c0_6], %5 {strides = array<i32>} : memref<8x256xf32, #tpu.memory_space<vmem>>, vector<8x256xf32>,
    return
  }
  func.func @transform_0(%arg0: i32, %arg1: i32) -> (i32, i32) {
    %c0_i32 = arith.constant 0 : i32
    return %arg0, %arg1 : i32, i32
  }
  func.func @transform_1(%arg0: i32, %arg1: i32) -> (i32, i32) {
    %c0_i32 = arith.constant 0 : i32
    %c0_i32_0 = arith.constant 0 : i32
    %c0_i32_1 = arith.constant 0 : i32
    return %c0_i32, %c0_i32_0 : i32, i32
  }
  func.func @transform_2(%arg0: i32, %arg1: i32) -> (i32, i32) {
    %c0_i32 = arith.constant 0 : i32
    %c0_i32_0 = arith.constant 0 : i32
    %c0_i32_1 = arith.constant 0 : i32
    return %c0_i32, %c0_i32_0 : i32, i32
  }
  func.func @transform_3(%arg0: i32, %arg1: i32) -> (i32, i32) {
    %c0_i32 = arith.constant 0 : i32
    return %arg0, %arg1 : i32, i32
  }
}

</mosaic_0001>

<bundles_post_ra>
// kernel: tpu_custom_call.1
= control target key start
LH: loop header
LB: loop body
LE: loop exit
PB: predicated region body
PF: predicated region fallthrough
CT: control target
= control target key end

     0   :  { %8 = vsyncpa [#allocation3], 0  ;;  %s214_s0 = inlined_call_operand.hbm [shape: f32[8,256], index: 0, kind: input, shape index: {}]   ;;  %s215_s1 = inlined_call_operand.vmem [shape: f32[8,8], index: 1, kind: input, shape index: {}]   ;;  %s216_s2 = inlined_call_operand.vmem [shape: f32[8,1], index: 2, kind: input, shape index: {}]   ;;  %s217_s3 = inlined_call_operand.hbm [shape: f32[8,256], index: 3, kind: output, shape index: {}]  }
   0x1   :  { %9 = vsyncpa [#allocation4], 0  ;;  %s178_s12 = smov [#allocation2]  }
   0x2   :  { %s16_s13 = sshll.u32 %s178_s12, 4  ;;  %s17_s13 = int_to_ptr.vmem [resolvable:$true] %s16_s13 }
   0x3   :  { %s142_s14 = scalar_lea.vmem %s17_s13, 256  ;;  %p147_p1 = scmp.lt.s32.totalorder %s17_s13, %s17_s13 }
   0x4   :  { %p143_p0 = scmp.ne.s32.totalorder %s17_s13, %s142_s14  ;;  %p148_p2 = scmp.lt.s32.totalorder %s142_s14, %s142_s14 }
   0x6   :  { %p149_p3 = por %p148_p2, %p147_p1 }
   0x8   :  { %p150_p4 = pnand %p149_p3, %p143_p0 }
   0xa   :  { %153 = shalt.err (!%p150_p4)
}
   0xb   :  { %19 = dma.hbm_to_vmem [thread:$0]  %s214_s0, 256, %s17_s13, [#allocation3]  }
   0xc   :  { %174 = dma.done.wait [#allocation3], 256  }
   0xd   :  { %175 = vsyncadd [#allocation3], 4294967040  ;;  %v179_v0 = vmov 0.0   ;;  %v180_v1 = vmov 0   ;;  %v29_v2 = vld [vmem:[#allocation2 + $0x8] sm:$0xff]  ;;  %v28_v3 = vld [vmem:[#allocation2] sm:$0xff] }
   0xe   :  { %104 = vmatprep.mubr.f32.mxu0 %v179_v0  ;;  %133 = vset.pattern.permute.xlu0 %v180_v1  ;;  %v27_v4 = vld [vmem:[%s215_s1] sm:$0xff]  ;;  %vm36_vm0 = vcmask 64512   ;;  %s181_s0 = smov [#allocation5]  }
   0xf   :  { %70 = vmatprep.subr.mxu0 %v29_v2  ;;  %v30_v5 = vld [vmem:[%s216_s2] sm:$0xff]  ;;  %s119_s21 = sshll.u32 %s181_s0, 4  ;;  %s120_s21 = int_to_ptr.vmem [resolvable:$true] %s119_s21 }
  0x10   :  { %71 = vmatpush1.msra.mxu0 %v28_v3  ;;  %33 = vperm.xlu0 %133, %v30_v5   ;;  %s154_s1 = scalar_lea.vmem %s120_s21, 256  ;;  %p159_p6 = scmp.lt.s32.totalorder %s120_s21, %s120_s21 }
  0x11   :  { %128 = vmatmul.mubr.msk.f32.vlgmr.msra.gmra.mxu0 %vm36_vm0, %v27_v4  ;;  %p155_p5 = scmp.ne.s32.totalorder %s120_s21, %s154_s1  ;;  %p160_p7 = scmp.lt.s32.totalorder %s154_s1, %s154_s1 }
  0x13   :  { %p161_p8 = por %p160_p7, %p159_p6 }
  0x15   :  { %p162_p9 = pnand %p161_p8, %p155_p5 }
  0x8b   :  { %v34_v6 = vpop.permute.xlu0 %33 }
  0xd1   :  { %v106_v7 = vpop.f32.mrf.mxu0 }
  0xd2   :  { %v107_v8 = vadd.f32 %v106_v7, %v34_v6 }
  0xd3   :  { %v108_v9 = vpop.f32.mrf.mxu0 }
  0xd4   :  { %111 = vst [vmem:[#allocation5] sm:$0xff] %v107_v8  ;;  %v109_v10 = vadd.f32 %v108_v9, %v34_v6 }
  0xd6   :  { %112 = vst [vmem:[#allocation5 + $0x8] sm:$0xff] %v109_v10 }
  0xd7   :  { %165 = shalt.err (!%p162_p9)
}
  0xd8   :  { %122 = dma.vmem_to_hbm [thread:$0]  %s120_s21, 256, %s217_s3, [#allocation4]  }
  0xd9   :  { %176 = dma.done.wait [#allocation4], 256  }
  0xda   :  { %177 = vsyncadd [#allocation4], 4294967040 }
  0xdb   :  { %126 = vsyncpa [#allocation3], 1 }
  0xdc   :  { %127 = vsyncpa [#allocation4], 1 }

</bundles_post_ra>
